<compile_context>
chip_gen: v7x
topology: tpu7x:2x2x1
jax: 0.10.0
libtpu: 0.0.40
codegen_flags: <defaults>
</compile_context>

<pallas_src>
import functools

import jax
import jax.numpy as jnp
from jax.experimental import pallas as pl
from jax.experimental.pallas import tpu as pltpu

LANE = 128          # padded feature width for every layer
N_LAYERS = 4
IN_FEATURES = 75
OUT_FEATURES = 9


def _cdiv(a, b):
    return (a + b - 1) // b


def _round_up(x, m):
    return ((x + m - 1) // m) * m


def _choose_tb(batch, tb_max):
    """Batch tile: multiple of 8, <= tb_max, >= 2 grid steps whenever the batch allows it."""
    tb = _round_up(max(_cdiv(batch, 2), 8), 8)   # two steps (one per v7x TensorCore) if B > 8
    return min(tb, tb_max)


def mlp_kernel(x_ref, w_ref, b_ref, o_ref):
    """x_ref: (tb, 75) f32; w_ref: (4, 128, 128) bf16; b_ref: (4, 1, 128) f32;
    o_ref: (tb, 128) bf16. Whole fused forward pass on one batch tile."""
    tb = x_ref.shape[0]

    # bf16 cast + lane-pad 75 -> 128 in VMEM (padded weight rows are zero, so this is exact).
    x = x_ref[...].astype(jnp.bfloat16)                                # (tb, 75)
    pad = jnp.zeros((tb, LANE - IN_FEATURES), jnp.bfloat16)            # (tb, 53)
    h = jnp.concatenate([x, pad], axis=-1)                             # (tb, 128)

    # layers 0..2: Linear + ReLU (f32 accumulate, bf16 re-cast for the next MXU pass)
    for layer in range(N_LAYERS - 1):
        h = jnp.dot(h, w_ref[layer], preferred_element_type=jnp.float32) + b_ref[layer]
        h = jnp.maximum(h, 0.0).astype(jnp.bfloat16)

    # output layer: no ReLU
    h = jnp.dot(h, w_ref[N_LAYERS - 1], preferred_element_type=jnp.float32) + b_ref[N_LAYERS - 1]

    o_ref[...] = h.astype(o_ref.dtype)   # bf16 store, lane-dense 128-wide


def _pad2(a, rows, cols):
    return jnp.pad(a, ((0, rows - a.shape[0]), (0, cols - a.shape[1])))


def prepare_packed_params(params):
    """Pack + pad the per-layer (w, b) pairs.

    params[name] = (w, b) with w: (in, out) f32 (PyTorch weight transposed), b: (1, out) f32.
    Returns:
      w_packed: (4, 128, 128) bf16, zero-padded
      b_packed: (4, 1, 128)  f32,  zero-padded
    """
    names = ["input", "hidden1", "hidden2", "output"]
    w_packed = jnp.stack([_pad2(params[n][0], LANE, LANE) for n in names])
    b_packed = jnp.stack([_pad2(params[n][1], 1, LANE) for n in names])
    return w_packed.astype(jnp.bfloat16), b_packed.astype(jnp.float32)


@functools.partial(jax.jit, static_argnames=("tb_max",))
def net_forward_packed(x, w_packed, b_packed, *, tb_max=2048):
    """x: (B, 75) float32. Returns (B, 9) float32 logits (bf16-rounded by the kernel)."""
    B, F = x.shape
    assert F == IN_FEATURES

    tb = _choose_tb(B, tb_max)
    grid = (_cdiv(B, tb),)

    flops = 2 * B * (LANE * LANE) * N_LAYERS
    bytes_accessed = (
        B * IN_FEATURES * 4            # x (f32, read as-is, no wrapper pad pass)
        + N_LAYERS * LANE * LANE * 2   # packed weights (bf16)
        + N_LAYERS * LANE * 4          # packed biases (f32)
        + B * LANE * 2                 # output (bf16)
    )

    out = pl.pallas_call(
        mlp_kernel,
        out_shape=jax.ShapeDtypeStruct((B, LANE), jnp.bfloat16),
        grid=grid,
        in_specs=[
            # batch tile i of x; last dim == full 75-wide feature extent
            pl.BlockSpec((tb, IN_FEATURES), lambda i: (i, 0)),
            # weights / biases: same block every step -> DMA'd once, VMEM-resident
            pl.BlockSpec((N_LAYERS, LANE, LANE), lambda i: (0, 0, 0)),
            pl.BlockSpec((N_LAYERS, 1, LANE), lambda i: (0, 0, 0)),
        ],
        out_specs=pl.BlockSpec((tb, LANE), lambda i: (i, 0)),
        compiler_params=pltpu.CompilerParams(
            dimension_semantics=("parallel",),
        ),
        cost_estimate=pl.CostEstimate(
            flops=flops, transcendentals=0, bytes_accessed=bytes_accessed
        ),
    )(x, w_packed, b_packed)

    # Tiny slice/cast on (B, 9) only — negligible next to the kernel's HBM traffic.
    return out[:, :OUT_FEATURES].astype(jnp.float32)


def net_forward(x, params, *, tb_max=2048):
    w_packed, b_packed = prepare_packed_params(params)
    return net_forward_packed(x, w_packed, b_packed, tb_max=tb_max)


def init_params(key):
    """Deterministic init matching the PyTorch layer shapes.
    PyTorch Linear weight is (out, in); we store the transpose (in, out)."""
    dims = [("input", 75, 100), ("hidden1", 100, 100),
            ("hidden2", 100, 50), ("output", 50, 9)]
    params = {}
    for name, fan_in, fan_out in dims:
        key, kw, kb = jax.random.split(key, 3)
        bound = 1.0 / jnp.sqrt(fan_in)
        w = jax.random.uniform(kw, (fan_in, fan_out), jnp.float32, -bound, bound)
        b = jax.random.uniform(kb, (1, fan_out), jnp.float32, -bound, bound)
        params[name] = (w, b)
    return params


def reference_forward(x, params):
    """Pure-JAX reference using the same bf16-in / f32-accumulate / bf16-out numerics."""
    h = x.astype(jnp.bfloat16)
    for name in ["input", "hidden1", "hidden2"]:
        w, b = params[name]
        h = jnp.dot(h, w.astype(jnp.bfloat16), preferred_element_type=jnp.float32) + b
        h = jnp.maximum(h, 0.0).astype(jnp.bfloat16)
    w, b = params["output"]
    out = jnp.dot(h, w.astype(jnp.bfloat16), preferred_element_type=jnp.float32) + b
    # Kernel emits bf16 logits; round the reference the same way before comparing.
    return out.astype(jnp.bfloat16).astype(jnp.float32)


if __name__ == "__main__":
    key = jax.random.PRNGKey(0)
    kx, kp = jax.random.split(key)

    B = 8
    x = jax.random.normal(kx, (B, IN_FEATURES), jnp.float32)
    params = init_params(kp)

    out = net_forward(x, params)
    out = jax.block_until_ready(out)

    ref = reference_forward(x, params)
    assert out.shape == (B, OUT_FEATURES)
    assert jnp.allclose(out, ref, atol=1e-2, rtol=1e-2), (
        float(jnp.max(jnp.abs(out - ref)))
    )

    print("KERNEL_OK")
</pallas_src>

<mosaic_0001>
module attributes {stable_mosaic.version = 11 : i64} {
  func.func @mlp_kernel(%arg0: i32, %arg1: memref<8x75xf32, #tpu.memory_space<vmem>>, %arg2: memref<4x128x128xbf16, #tpu.memory_space<vmem>>, %arg3: memref<4x1x128xf32, #tpu.memory_space<vmem>>, %arg4: memref<8x128xbf16, #tpu.memory_space<vmem>>) attributes {dimension_semantics = [#tpu.dimension_semantics<parallel>], iteration_bounds = array<i64: 1>, scalar_prefetch = 0 : i64, scratch_operands = 0 : i64, tpu.core_type = #tpu.core_type<tc>, window_params = [{transform_indices = @transform_0, window_bounds = array<i64: 8, 75>}, {pipeline_mode = #tpu.pipeline_mode<synchronous>, transform_indices = @transform_1, window_bounds = array<i64: 4, 128, 128>}, {pipeline_mode = #tpu.pipeline_mode<synchronous>, transform_indices = @transform_2, window_bounds = array<i64: 4, 1, 128>}, {transform_indices = @transform_3, window_bounds = array<i64: 8, 128>}]} {
    %c0 = arith.constant 0 : index
    %c0_0 = arith.constant 0 : index
    %0 = vector.load %arg1[%c0, %c0_0] : memref<8x75xf32, #tpu.memory_space<vmem>>, vector<8x75xf32>
    %1 = arith.truncf %0 : vector<8x75xf32> to vector<8x75xbf16>
    %cst = arith.constant 0.000000e+00 : bf16
    %2 = vector.broadcast %cst : bf16 to vector<8x53xbf16>
    %3 = tpu.concatenate %1, %2 in 1 : vector<8x75xbf16>, vector<8x53xbf16> -> vector<8x128xbf16>
    %c0_1 = arith.constant 0 : index
    %c0_2 = arith.constant 0 : index
    %c0_3 = arith.constant 0 : index
    %4 = vector.load %arg2[%c0_1, %c0_2, %c0_3] : memref<4x128x128xbf16, #tpu.memory_space<vmem>>, vector<1x128x128xbf16>
    %5 = vector.shape_cast %4 : vector<1x128x128xbf16> to vector<128x128xbf16>
    %cst_4 = arith.constant dense<0.000000e+00> : vector<8x128xf32>
    %6 = tpu.matmul %3, %5, %cst_4 {dimension_numbers = #tpu.dot_dimension_numbers<[1], [0], [0], [1], [0, 0, 1, 1], [], []>} : vector<8x128xbf16>, vector<128x128xbf16>, vector<8x128xf32> -> vector<8x128xf32>
    %c0_5 = arith.constant 0 : index
    %c0_6 = arith.constant 0 : index
    %c0_7 = arith.constant 0 : index
    %7 = vector.load %arg3[%c0_5, %c0_6, %c0_7] : memref<4x1x128xf32, #tpu.memory_space<vmem>>, vector<1x1x128xf32>
    %8 = vector.shape_cast %7 : vector<1x1x128xf32> to vector<1x128xf32>
    %9 = vector.broadcast %8 : vector<1x128xf32> to vector<8x128xf32>
    %10 = arith.addf %6, %9 : vector<8x128xf32>
    %cst_8 = arith.constant 0.000000e+00 : f32
    %11 = vector.broadcast %cst_8 : f32 to vector<8x128xf32>
    %12 = arith.maximumf %10, %11 : vector<8x128xf32>
    %13 = arith.truncf %12 : vector<8x128xf32> to vector<8x128xbf16>
    %c1 = arith.constant 1 : index
    %c0_9 = arith.constant 0 : index
    %c0_10 = arith.constant 0 : index
    %14 = vector.load %arg2[%c1, %c0_9, %c0_10] : memref<4x128x128xbf16, #tpu.memory_space<vmem>>, vector<1x128x128xbf16>
    %15 = vector.shape_cast %14 : vector<1x128x128xbf16> to vector<128x128xbf16>
    %cst_11 = arith.constant dense<0.000000e+00> : vector<8x128xf32>
    %16 = tpu.matmul %13, %15, %cst_11 {dimension_numbers = #tpu.dot_dimension_numbers<[1], [0], [0], [1], [0, 0, 1, 1], [], []>} : vector<8x128xbf16>, vector<128x128xbf16>, vector<8x128xf32> -> vector<8x128xf32>
    %c1_12 = arith.constant 1 : index
    %c0_13 = arith.constant 0 : index
    %c0_14 = arith.constant 0 : index
    %17 = vector.load %arg3[%c1_12, %c0_13, %c0_14] : memref<4x1x128xf32, #tpu.memory_space<vmem>>, vector<1x1x128xf32>
    %18 = vector.shape_cast %17 : vector<1x1x128xf32> to vector<1x128xf32>
    %19 = vector.broadcast %18 : vector<1x128xf32> to vector<8x128xf32>
    %20 = arith.addf %16, %19 : vector<8x128xf32>
    %cst_15 = arith.constant 0.000000e+00 : f32
    %21 = vector.broadcast %cst_15 : f32 to vector<8x128xf32>
    %22 = arith.maximumf %20, %21 : vector<8x128xf32>
    %23 = arith.truncf %22 : vector<8x128xf32> to vector<8x128xbf16>
    %c2 = arith.constant 2 : index
    %c0_16 = arith.constant 0 : index
    %c0_17 = arith.constant 0 : index
    %24 = vector.load %arg2[%c2, %c0_16, %c0_17] : memref<4x128x128xbf16, #tpu.memory_space<vmem>>, vector<1x128x128xbf16>
    %25 = vector.shape_cast %24 : vector<1x128x128xbf16> to vector<128x128xbf16>
    %cst_18 = arith.constant dense<0.000000e+00> : vector<8x128xf32>
    %26 = tpu.matmul %23, %25, %cst_18 {dimension_numbers = #tpu.dot_dimension_numbers<[1], [0], [0], [1], [0, 0, 1, 1], [], []>} : vector<8x128xbf16>, vector<128x128xbf16>, vector<8x128xf32> -> vector<8x128xf32>
    %c2_19 = arith.constant 2 : index
    %c0_20 = arith.constant 0 : index
    %c0_21 = arith.constant 0 : index
    %27 = vector.load %arg3[%c2_19, %c0_20, %c0_21] : memref<4x1x128xf32, #tpu.memory_space<vmem>>, vector<1x1x128xf32>
    %28 = vector.shape_cast %27 : vector<1x1x128xf32> to vector<1x128xf32>
    %29 = vector.broadcast %28 : vector<1x128xf32> to vector<8x128xf32>
    %30 = arith.addf %26, %29 : vector<8x128xf32>
    %cst_22 = arith.constant 0.000000e+00 : f32
    %31 = vector.broadcast %cst_22 : f32 to vector<8x128xf32>
    %32 = arith.maximumf %30, %31 : vector<8x128xf32>
    %33 = arith.truncf %32 : vector<8x128xf32> to vector<8x128xbf16>
    %c3 = arith.constant 3 : index
    %c0_23 = arith.constant 0 : index
    %c0_24 = arith.constant 0 : index
    %34 = vector.load %arg2[%c3, %c0_23, %c0_24] : memref<4x128x128xbf16, #tpu.memory_space<vmem>>, vector<1x128x128xbf16>
    %35 = vector.shape_cast %34 : vector<1x128x128xbf16> to vector<128x128xbf16>
    %cst_25 = arith.constant dense<0.000000e+00> : vector<8x128xf32>
    %36 = tpu.matmul %33, %35, %cst_25 {dimension_numbers = #tpu.dot_dimension_numbers<[1], [0], [0], [1], [0, 0, 1, 1], [], []>} : vector<8x128xbf16>, vector<128x128xbf16>, vector<8x128xf32> -> vector<8x128xf32>
    %c3_26 = arith.constant 3 : index
    %c0_27 = arith.constant 0 : index
    %c0_28 = arith.constant 0 : index
    %37 = vector.load %arg3[%c3_26, %c0_27, %c0_28] : memref<4x1x128xf32, #tpu.memory_space<vmem>>, vector<1x1x128xf32>
    %38 = vector.shape_cast %37 : vector<1x1x128xf32> to vector<1x128xf32>
    %39 = vector.broadcast %38 : vector<1x128xf32> to vector<8x128xf32>
    %40 = arith.addf %36, %39 : vector<8x128xf32>
    %41 = arith.truncf %40 : vector<8x128xf32> to vector<8x128xbf16>
    %c0_29 = arith.constant 0 : index
    %c0_30 = arith.constant 0 : index
    %42 = vector.load %arg4[%c0_29, %c0_30] : memref<8x128xbf16, #tpu.memory_space<vmem>>, vector<8x128xbf16>
    tpu.vector_store %arg4[%c0_29, %c0_30], %41 {strides = array<i32>} : memref<8x128xbf16, #tpu.memory_space<vmem>>, vector<8x128xbf16>,
    return
  }
  func.func @transform_0(%arg0: i32) -> (i32, i32) {
    %c0_i32 = arith.constant 0 : i32
    %c0_i32_0 = arith.constant 0 : i32
    return %arg0, %c0_i32 : i32, i32
  }
  func.func @transform_1(%arg0: i32) -> (i32, i32, i32) {
    %c0_i32 = arith.constant 0 : i32
    %c0_i32_0 = arith.constant 0 : i32
    %c0_i32_1 = arith.constant 0 : i32
    %c0_i32_2 = arith.constant 0 : i32
    return %c0_i32, %c0_i32_0, %c0_i32_1 : i32, i32, i32
  }
  func.func @transform_2(%arg0: i32) -> (i32, i32, i32) {
    %c0_i32 = arith.constant 0 : i32
    %c0_i32_0 = arith.constant 0 : i32
    %c0_i32_1 = arith.constant 0 : i32
    %c0_i32_2 = arith.constant 0 : i32
    return %c0_i32, %c0_i32_0, %c0_i32_1 : i32, i32, i32
  }
  func.func @transform_3(%arg0: i32) -> (i32, i32) {
    %c0_i32 = arith.constant 0 : i32
    %c0_i32_0 = arith.constant 0 : i32
    return %arg0, %c0_i32 : i32, i32
  }
}

</mosaic_0001>

<bundles_post_ra>
// kernel: net_forward_packed.1
= control target key start
LH: loop header
LB: loop body
LE: loop exit
PB: predicated region body
PF: predicated region fallthrough
CT: control target
= control target key end

     0   :  { %8 = vsyncpa [#allocation3], 0  ;;  %s866_s0 = inlined_call_operand.hbm [shape: f32[8,75], index: 0, kind: input, shape index: {}]   ;;  %s867_s1 = inlined_call_operand.hbm [shape: bf16[4,128,128], index: 1, kind: input, shape index: {}]   ;;  %s868_s2 = inlined_call_operand.vmem [shape: f32[4,1,128], index: 2, kind: input, shape index: {}]   ;;  %s869_s3 = inlined_call_operand.vmem [shape: bf16[8,128], index: 3, kind: output, shape index: {}]  }
   0x1   :  { %9 = vsyncpa [#allocation5], 0  ;;  %s754_s12 = smov [#allocation2]   ;;  %s755_s14 = smov [#allocation4]  }
   0x2   :  { %s16_s13 = sshll.u32 %s754_s12, 4  ;;  %s25_s15 = sshll.u32 %s755_s14, 4  ;;  %s17_s13 = int_to_ptr.vmem [resolvable:$true] %s16_s13  ;;  %s780_s15 = int_to_ptr.vmem [resolvable:$true] %s25_s15 }
   0x3   :  { %s706_s18 = scalar_lea.hbm %s866_s0, 128 }
   0x4   :  { %p707_p0 = scmp.ne.s32.totalorder %s866_s0, %s706_s18  ;;  %p710_p1 = scmp.lt.u32.totalorder %s706_s18, %s866_s0 }
   0x6   :  { %p712_p2 = pnand %p710_p1, %p707_p0 }
   0x8   :  { %715 = shalt.err (!%p712_p2)
}
   0x9   :  { %s716_s23 = scalar_lea.vmem %s17_s13, 128  ;;  %p721_p4 = scmp.lt.s32.totalorder %s17_s13, %s17_s13 }
   0xa   :  { %p717_p3 = scmp.ne.s32.totalorder %s17_s13, %s716_s23  ;;  %p722_p5 = scmp.lt.s32.totalorder %s716_s23, %s716_s23 }
   0xc   :  { %p723_p6 = por %p722_p5, %p721_p4 }
   0xe   :  { %p724_p7 = pnand %p723_p6, %p717_p3 }
  0x10   :  { %727 = shalt.err (!%p724_p7)
}
  0x11   :  { %19 = dma.hbm_to_vmem [thread:$0]  %s866_s0, 128, %s17_s13, [#allocation3]  }
  0x12   :  { %s728_s28 = scalar_lea.hbm %s867_s1, 4096 }
  0x13   :  { %p729_p8 = scmp.ne.s32.totalorder %s867_s1, %s728_s28  ;;  %p732_p9 = scmp.lt.u32.totalorder %s728_s28, %s867_s1 }
  0x15   :  { %p734_p10 = pnand %p732_p9, %p729_p8 }
  0x17   :  { %737 = shalt.err (!%p734_p10)
}
  0x18   :  { %s738_s6 = scalar_lea.vmem %s780_s15, 4096  ;;  %p743_p12 = scmp.lt.s32.totalorder %s780_s15, %s780_s15 }
  0x19   :  { %p739_p11 = scmp.ne.s32.totalorder %s780_s15, %s738_s6  ;;  %p744_p13 = scmp.lt.s32.totalorder %s738_s6, %s738_s6 }
  0x1b   :  { %p745_p0 = por %p744_p13, %p743_p12 }
  0x1d   :  { %p746_p1 = pnand %p745_p0, %p739_p11 }
  0x1f   :  { %749 = shalt.err (!%p746_p1)
}
  0x20   :  { %s756_s0 = smov 64   ;;  %s757_s7 = smov 4  }
  0x21   :  { %31 = dma.hbm_to_vmem [thread:$0]  %s867_s1, 4096, %s780_s15, [#allocation5], %s756_s0, %s756_s0, %s757_s7  }
  0x22   :  { %750 = dma.done.wait [#allocation3], 128  }
  0x23   :  { %751 = vsyncadd [#allocation3], 4294967168 }
  0x24   :  { %752 = dma.done.wait [#allocation5], 4096  }
  0x25   :  { %753 = vsyncadd [#allocation5], 4294963200  ;;  %v758_v0 = vmov 0.0   ;;  %vm759_vm0 = vmmov 0   ;;  %v674_v1 = vld [vmem:[#allocation4] sm:$0xff]   ;;  %v675_v2 = vld [vmem:[#allocation4 + $0x8] sm:$0xff]  }
  0x26   :  { %588 = vmatprep.subr.bf16.mxu0 %v758_v0  ;;  %604 = vmatprep.mubr.msk.bf16.mxu0 %vm759_vm0, %v758_v0  ;;  %v676_v3 = vld [vmem:[#allocation4 + $0x10] sm:$0xff]   ;;  %v682_v4 = vld [vmem:[#allocation4 + $0x40] sm:$0xff]   ;;  %v677_v5 = vld [vmem:[#allocation4 + $0x18] sm:$0xff]   ;;  %vm43_vm1 = vcmask 613376  }
  0x27   :  { %608 = vmatprep.subr.bf16.mxu1 %v758_v0  ;;  %624 = vmatprep.mubr.msk.bf16.mxu1 %vm759_vm0, %v758_v0  ;;  %v683_v6 = vld [vmem:[#allocation4 + $0x48] sm:$0xff]   ;;  %v678_v7 = vld [vmem:[#allocation4 + $0x20] sm:$0xff]   ;;  %v684_v8 = vld [vmem:[#allocation4 + $0x50] sm:$0xff]  }
  0x28   :  { %589 = vmatpush3.bf16.msra.mxu0 %v674_v1  ;;  %609 = vmatpush3.bf16.msra.mxu1 %v682_v4  ;;  %v679_v9 = vld [vmem:[#allocation4 + $0x28] sm:$0xff]   ;;  %v685_v10 = vld [vmem:[#allocation4 + $0x58] sm:$0xff]   ;;  %v680_v11 = vld [vmem:[#allocation4 + $0x30] sm:$0xff]  }
  0x29   :  { %590 = vmatprep.subr.bf16.mxu0 %v758_v0  ;;  %610 = vmatprep.subr.bf16.mxu1 %v758_v0  ;;  %v686_v12 = vld [vmem:[#allocation4 + $0x60] sm:$0xff]   ;;  %v681_v13 = vld [vmem:[#allocation4 + $0x38] sm:$0xff]   ;;  %v687_v15 = vld [vmem:[#allocation4 + $0x68] sm:$0xff]  }
  0x2a   :  { %v41_v14 = vld [vmem:[#allocation2] sm:$0xff]  ;;  %v688_v17 = vld [vmem:[#allocation4 + $0x70] sm:$0xff]   ;;  %v690_v19 = vld [vmem:[#allocation4 + $0x80] sm:$0xff]  }
  0x2b   :  { %v42_v16 = vpack.c.bf16 %v41_v14, %v41_v14  ;;  %v689_v18 = vld [vmem:[#allocation4 + $0x78] sm:$0xff]   ;;  %v691_v20 = vld [vmem:[#allocation4 + $0x88] sm:$0xff]   ;;  %v692_v21 = vld [vmem:[#allocation4 + $0x90] sm:$0xff]  }
  0x2c   :  { %591 = vmatpush3.bf16.msra.mxu0 %v675_v2  ;;  %611 = vmatpush3.bf16.msra.mxu1 %v683_v6  ;;  %v693_v22 = vld [vmem:[#allocation4 + $0x98] sm:$0xff]   ;;  %v694_v23 = vld [vmem:[#allocation4 + $0xa0] sm:$0xff]   ;;  %v695_v24 = vld [vmem:[#allocation4 + $0xa8] sm:$0xff]  }
  0x2d   :  { %592 = vmatprep.subr.bf16.mxu0 %v758_v0  ;;  %612 = vmatprep.subr.bf16.mxu1 %v758_v0  ;;  %v512_v25 = vld [vmem:[%s868_s2] ss:$0 sm:$0xff]  ;;  %v697_v34 = vld [vmem:[#allocation4 + $0xb8] sm:$0xff]   ;;  %v698_v35 = vld [vmem:[#allocation4 + $0xc0] sm:$0xff]  }
  0x2e   :  { %v696_v33 = vld [vmem:[#allocation4 + $0xb0] sm:$0xff]   ;;  %v699_v36 = vld [vmem:[#allocation4 + $0xc8] sm:$0xff]   ;;  %v701_v38 = vld [vmem:[#allocation4 + $0xd8] sm:$0xff]  }
  0x2f   :  { %v700_v37 = vld [vmem:[#allocation4 + $0xd0] sm:$0xff]   ;;  %v702_v39 = vld [vmem:[#allocation4 + $0xe0] sm:$0xff]   ;;  %v703_v40 = vld [vmem:[#allocation4 + $0xe8] sm:$0xff]  }
  0x30   :  { %593 = vmatpush3.bf16.msra.mxu0 %v676_v3  ;;  %613 = vmatpush3.bf16.msra.mxu1 %v684_v8  ;;  %v523_v41 = vld [vmem:[%s868_s2 + $0x1] ss:$0 sm:$0xff]  ;;  %v705_v50 = vld [vmem:[#allocation4 + $0xf8] sm:$0xff]   ;;  %v533_v51 = vld [vmem:[%s868_s2 + $0x2] ss:$0 sm:$0xff] }
  0x31   :  { %594 = vmatprep.subr.bf16.mxu0 %v758_v0  ;;  %614 = vmatprep.subr.bf16.mxu1 %v758_v0  ;;  %v704_v49 = vld [vmem:[#allocation4 + $0xf0] sm:$0xff]  }
  0x32   :  { %v543_v59 = vld [vmem:[%s868_s2 + $0x3] ss:$0 sm:$0xff] }
  0x34   :  { %595 = vmatpush3.bf16.msra.mxu0 %v677_v5  ;;  %615 = vmatpush3.bf16.msra.mxu1 %v685_v10 }
  0x35   :  { %596 = vmatprep.subr.bf16.mxu0 %v758_v0  ;;  %616 = vmatprep.subr.bf16.mxu1 %v758_v0 }
  0x38   :  { %597 = vmatpush3.bf16.msra.mxu0 %v678_v7  ;;  %617 = vmatpush3.bf16.msra.mxu1 %v686_v12 }
  0x39   :  { %598 = vmatprep.subr.bf16.mxu0 %v758_v0  ;;  %618 = vmatprep.subr.bf16.mxu1 %v758_v0 }
  0x3c   :  { %599 = vmatpush3.bf16.msra.mxu0 %v679_v9  ;;  %619 = vmatpush3.bf16.msra.mxu1 %v687_v15 }
  0x3d   :  { %600 = vmatprep.subr.bf16.mxu0 %v758_v0  ;;  %620 = vmatprep.subr.bf16.mxu1 %v758_v0 }
  0x40   :  { %601 = vmatpush3.bf16.msra.mxu0 %v680_v11  ;;  %621 = vmatpush3.bf16.msra.mxu1 %v688_v17 }
  0x41   :  { %602 = vmatprep.subr.bf16.mxu0 %v758_v0  ;;  %622 = vmatprep.subr.bf16.mxu1 %v758_v0 }
  0x44   :  { %603 = vmatpush3.bf16.msra.mxu0 %v681_v13  ;;  %623 = vmatpush3.bf16.msra.mxu1 %v689_v18 }
  0x45   :  { %628 = vmatprep.subr.bf16.mxu0 %v758_v0  ;;  %648 = vmatprep.subr.bf16.mxu1 %v758_v0 }
  0x47   :  { %605 = vmatmul.mubr.msk.bf16.vlgmr.msra.gmra.mrb[0].mxu0 %vm43_vm1, %v42_v16 }
  0x48   :  { %644 = vmatprep.mubr.msk.bf16.mxu0 %vm759_vm0, %v758_v0  ;;  %629 = vmatpush3.bf16.msra.mxu0 %v690_v19 }
  0x49   :  { %630 = vmatprep.subr.bf16.mxu0 %v758_v0 }
  0x4c   :  { %631 = vmatpush3.bf16.msra.mxu0 %v691_v20 }
  0x4d   :  { %632 = vmatprep.subr.bf16.mxu0 %v758_v0 }
  0x50   :  { %633 = vmatpush3.bf16.msra.mxu0 %v692_v21 }
  0x51   :  { %634 = vmatprep.subr.bf16.mxu0 %v758_v0 }
  0x54   :  { %635 = vmatpush3.bf16.msra.mxu0 %v693_v22 }
  0x55   :  { %636 = vmatprep.subr.bf16.mxu0 %v758_v0 }
  0x58   :  { %637 = vmatpush3.bf16.msra.mxu0 %v694_v23 }
  0x59   :  { %638 = vmatprep.subr.bf16.mxu0 %v758_v0 }
  0x5c   :  { %639 = vmatpush3.bf16.msra.mxu0 %v695_v24 }
  0x5d   :  { %640 = vmatprep.subr.bf16.mxu0 %v758_v0 }
  0x60   :  { %641 = vmatpush3.bf16.msra.mxu0 %v696_v33 }
  0x61   :  { %642 = vmatprep.subr.bf16.mxu0 %v758_v0 }
  0x64   :  { %643 = vmatpush3.bf16.msra.mxu0 %v697_v34 }
 0x11a   :  { %v153_v26 = vpop.f32.mrb[0].mxu0 }
 0x11b   :  { %v154_v27 = vadd.f32 %v512_v25, %v153_v26  ;;  %v606_v28 = vpop.f32.mrb[1].mxu0 }
 0x11c   :  { %v156_v29 = vpop.f32.mrb[2].mxu0 }
 0x11d   :  { %v159_v30 = vmax.f32 %v154_v27, 0.0  ;;  %v607_v31 = vpop.f32.mrb[3].mxu0 }
 0x11f   :  { %v160_v32 = vpack.c.bf16 %v159_v30, %v159_v30 }
 0x121   :  { %625 = vmatmul.mubr.bf16.vlgmr.msra.gmra.mrb[0].mxu1 %v160_v32 }
 0x122   :  { %664 = vmatprep.mubr.msk.bf16.mxu1 %vm759_vm0, %v758_v0  ;;  %649 = vmatpush3.bf16.msra.mxu1 %v698_v35 }
 0x123   :  { %650 = vmatprep.subr.bf16.mxu1 %v758_v0 }
 0x126   :  { %651 = vmatpush3.bf16.msra.mxu1 %v699_v36 }
 0x127   :  { %652 = vmatprep.subr.bf16.mxu1 %v758_v0 }
 0x12a   :  { %653 = vmatpush3.bf16.msra.mxu1 %v700_v37 }
 0x12b   :  { %654 = vmatprep.subr.bf16.mxu1 %v758_v0 }
 0x12e   :  { %655 = vmatpush3.bf16.msra.mxu1 %v701_v38 }
 0x12f   :  { %656 = vmatprep.subr.bf16.mxu1 %v758_v0 }
 0x132   :  { %657 = vmatpush3.bf16.msra.mxu1 %v702_v39 }
 0x133   :  { %658 = vmatprep.subr.bf16.mxu1 %v758_v0 }
 0x136   :  { %659 = vmatpush3.bf16.msra.mxu1 %v703_v40 }
 0x137   :  { %660 = vmatprep.subr.bf16.mxu1 %v758_v0 }
 0x13a   :  { %661 = vmatpush3.bf16.msra.mxu1 %v704_v49 }
 0x13b   :  { %662 = vmatprep.subr.bf16.mxu1 %v758_v0 }
 0x13e   :  { %663 = vmatpush3.bf16.msra.mxu1 %v705_v50 }
 0x1f4   :  { %v268_v42 = vpop.f32.mrb[0].mxu1 }
 0x1f5   :  { %v269_v43 = vadd.f32 %v523_v41, %v268_v42  ;;  %v626_v44 = vpop.f32.mrb[1].mxu1 }
 0x1f6   :  { %v271_v45 = vpop.f32.mrb[2].mxu1 }
 0x1f7   :  { %v274_v46 = vmax.f32 %v269_v43, 0.0  ;;  %v627_v47 = vpop.f32.mrb[3].mxu1 }
 0x1f9   :  { %v275_v48 = vpack.c.bf16 %v274_v46, %v274_v46 }
 0x1fb   :  { %645 = vmatmul.mubr.bf16.vlgmr.msra.gmra.mrb[4].mxu0 %v275_v48 }
 0x2ce   :  { %v383_v52 = vpop.f32.mrb[4].mxu0 }
 0x2cf   :  { %v384_v53 = vadd.f32 %v533_v51, %v383_v52  ;;  %v646_v54 = vpop.f32.mrb[5].mxu0 }
 0x2d0   :  { %v386_v55 = vpop.f32.mrb[6].mxu0 }
 0x2d1   :  { %v389_v56 = vmax.f32 %v384_v53, 0.0  ;;  %v647_v57 = vpop.f32.mrb[7].mxu0 }
 0x2d3   :  { %v390_v58 = vpack.c.bf16 %v389_v56, %v389_v56 }
 0x2d5   :  { %665 = vmatmul.mubr.bf16.vlgmr.msra.gmra.mrb[4].mxu1 %v390_v58 }
 0x3a8   :  { %v498_v60 = vpop.f32.mrb[4].mxu1 }
 0x3a9   :  { %v499_v61 = vadd.f32 %v543_v59, %v498_v60  ;;  %v666_v62 = vpop.f32.mrb[5].mxu1 }
 0x3aa   :  { %v501_v63 = vpop.f32.mrb[6].mxu1 }
 0x3ab   :  { %v504_v0 = vpack.c.bf16 %v499_v61, %v499_v61  ;;  %v667_v1 = vpop.f32.mrb[7].mxu1 }
 0x3ad   :  { %505 = vst [vmem:[%s869_s3] sm:$0xf] %v504_v0 }
 0x3ae   :  { %510 = vsyncpa [#allocation3], 1 }
 0x3af   :  { %511 = vsyncpa [#allocation5], 1 }

</bundles_post_ra>
